<compile_context>
chip_gen: v5e
topology: v5e:2x2
jax: 0.10.0
libtpu: 0.0.40
codegen_flags: <defaults>
</compile_context>

<pallas_src>
import math

import jax
import jax.numpy as jnp
from jax import lax
from jax.experimental import pallas as pl
from jax.experimental.pallas import tpu as pltpu


def _make_attn_kernel(T, C, n_head, head_dim):
    hd = head_dim

    def kernel(x_ref, wqkv_ref, bqkv_ref, wp_ref, bp_ref,
               y_ref, att_ref, acc_ref, mask_ref):
        h = pl.program_id(1)

        # Once per batch element: zero the projection accumulator and (re)build the
        # additive causal mask in VMEM (reused for all heads of this batch element).
        @pl.when(h == 0)
        def _():
            acc_ref[...] = jnp.zeros_like(acc_ref)
            row = lax.broadcasted_iota(jnp.int32, (T, T), 0)
            col = lax.broadcasted_iota(jnp.int32, (T, T), 1)
            mask_ref[...] = jnp.where(col <= row,
                                      jnp.float32(0.0),
                                      jnp.float32(-jnp.inf))

        x = x_ref[0]                                            # (T, C) bf16

        # Fused per-head QKV projection: one MXU dot with N = 3*hd, f32 accumulate.
        # The 1/sqrt(hd) scale is already folded into the q columns / bias (host side).
        w = wqkv_ref[h]                                         # (C, 3*hd) bf16
        b = bqkv_ref[h]                                         # (1, 3*hd) f32
        qkv = jnp.dot(x, w, preferred_element_type=jnp.float32) + b   # (T, 3*hd) f32

        q = qkv[:, 0 * hd:1 * hd].astype(jnp.bfloat16)          # (T, hd)
        k = qkv[:, 1 * hd:2 * hd].astype(jnp.bfloat16)          # (T, hd)
        v = qkv[:, 2 * hd:3 * hd].astype(jnp.bfloat16)          # (T, hd)

        # Attention logits (already scaled): NT matmul contracting head_dim.
        s = lax.dot_general(q, k, (((1,), (1,)), ((), ())),
                            preferred_element_type=jnp.float32)  # (T, T) f32

        # Causal mask: single add against the resident VMEM mask.
        s = s + mask_ref[...]

        # Softmax in f32; reciprocal routed to the EUP slot.
        m = jnp.max(s, axis=-1, keepdims=True)
        e = jnp.exp(s - m)
        denom = jnp.sum(e, axis=-1, keepdims=True)
        p = e * pl.reciprocal(denom, approx=True)                # (T, T) f32

        # attn_save (pre-dropout softmax), written back in the (cheaper) output dtype.
        att_ref[0, 0] = p.astype(att_ref.dtype)

        # Per-head context + output-projection accumulation:
        #   y_b += (p @ v_h) @ Wp_h   where Wp_h is the (hd, C) row-slice of Wp^T.
        ctx = jnp.dot(p.astype(jnp.bfloat16), v,
                      preferred_element_type=jnp.float32)        # (T, hd) f32
        acc_ref[...] += jnp.dot(ctx.astype(jnp.bfloat16), wp_ref[h],
                                preferred_element_type=jnp.float32)

        # Finalize: add projection bias and store once per batch element.
        @pl.when(h == n_head - 1)
        def _():
            y_ref[0] = (acc_ref[...] + bp_ref[...]).astype(y_ref.dtype)

    return kernel


def _vmem_limit_bytes(T, C, y_itemsize):
    # Rough per-core working set: resident weights (x2 buffer safety), pipelined
    # x / y / att blocks, mask + accumulator scratch, live (T, T) f32 temporaries.
    weights = 2 * (4 * C * C) * 2
    x_blk = 2 * T * C * 2
    y_blk = 2 * T * C * y_itemsize
    att_blk = 2 * T * T * 2
    mask = T * T * 4
    acc = T * C * 4
    temps = 5 * T * T * 4
    est = int(1.2 * (weights + x_blk + y_blk + att_blk + mask + acc + temps))
    return min(max(est, 32 * 1024 * 1024), 96 * 1024 * 1024)


def causal_self_attention(x, params, n_head, att_dtype=jnp.bfloat16):
    """Forward pass of CausalSelfAttention (eval mode: dropout = identity).

    `params` follow the PyTorch nn.Linear convention: W is (out, in), y = x @ W.T + b.
    Returns (y, attn_save). attn_save is emitted in `att_dtype` (bf16 by default to
    halve the dominant HBM writeback; pass jnp.float32 for strict parity).
    """
    B, T, C = x.shape
    assert C % n_head == 0
    hd = C // n_head
    wk, bk, wq, bq, wv, bv, wp, bp = params

    bf16, f32 = jnp.bfloat16, jnp.float32
    scale = 1.0 / math.sqrt(hd)

    # Host-side repacking (free): (out, in) -> (in, out) -> per-head slabs, with the
    # softmax scale folded into the q columns / bias.
    def per_head_in_out(w):             # (C, C) -> (n_head, C_in, hd)
        return w.T.reshape(C, n_head, hd).transpose(1, 0, 2)

    wq_h = per_head_in_out(wq) * scale
    wk_h = per_head_in_out(wk)
    wv_h = per_head_in_out(wv)
    w_qkv = jnp.concatenate([wq_h, wk_h, wv_h], axis=-1).astype(bf16)   # (H, C, 3*hd)

    bq_h = (bq * scale).reshape(n_head, 1, hd)
    bk_h = bk.reshape(n_head, 1, hd)
    bv_h = bv.reshape(n_head, 1, hd)
    b_qkv = jnp.concatenate([bq_h, bk_h, bv_h], axis=-1).astype(f32)    # (H, 1, 3*hd)

    # Output projection: Wp^T is (C_in, C_out); split the *input* axis per head.
    wp_h = wp.T.reshape(n_head, hd, C).astype(bf16)                     # (H, hd, C)
    bp2 = bp.reshape(1, C).astype(f32)

    x_bf = x.astype(bf16)

    # Weights / biases: full-array, constant index_map -> DMA'd once, VMEM-resident.
    wqkv_spec = pl.BlockSpec((n_head, C, 3 * hd), lambda b, h: (0, 0, 0))
    bqkv_spec = pl.BlockSpec((n_head, 1, 3 * hd), lambda b, h: (0, 0, 0))
    wp_spec = pl.BlockSpec((n_head, hd, C), lambda b, h: (0, 0, 0))
    bp_spec = pl.BlockSpec((1, C), lambda b, h: (0, 0))

    y, att = pl.pallas_call(
        _make_attn_kernel(T, C, n_head, hd),
        out_shape=(
            jax.ShapeDtypeStruct((B, T, C), x.dtype),
            jax.ShapeDtypeStruct((B, n_head, T, T), att_dtype),
        ),
        grid_spec=pltpu.PrefetchScalarGridSpec(
            num_scalar_prefetch=0,
            grid=(B, n_head),                          # head = reduction axis (last)
            in_specs=[
                pl.BlockSpec((1, T, C), lambda b, h: (b, 0, 0)),    # x
                wqkv_spec,                                          # fused qkv weight
                bqkv_spec,                                          # fused qkv bias
                wp_spec,                                            # out-proj weight
                bp_spec,                                            # out-proj bias
            ],
            out_specs=[
                pl.BlockSpec((1, T, C), lambda b, h: (b, 0, 0)),        # y (acc over h)
                pl.BlockSpec((1, 1, T, T), lambda b, h: (b, h, 0, 0)),  # attn_save
            ],
            scratch_shapes=[
                pltpu.VMEM((T, C), jnp.float32),       # output-projection accumulator
                pltpu.VMEM((T, T), jnp.float32),       # additive causal mask
            ],
        ),
        compiler_params=pltpu.CompilerParams(
            dimension_semantics=("parallel", "arbitrary"),
            vmem_limit_bytes=_vmem_limit_bytes(T, C, jnp.dtype(x.dtype).itemsize),
        ),
    )(x_bf, w_qkv, b_qkv, wp_h, bp2)
    return y, att


def _reference(x, params, n_head):
    # Pure-JAX f32 reference for sanity checking.
    B, T, C = x.shape
    hd = C // n_head
    wk, bk, wq, bq, wv, bv, wp, bp = params
    k = (x @ wk.T + bk).reshape(B, T, n_head, hd).transpose(0, 2, 1, 3)
    q = (x @ wq.T + bq).reshape(B, T, n_head, hd).transpose(0, 2, 1, 3)
    v = (x @ wv.T + bv).reshape(B, T, n_head, hd).transpose(0, 2, 1, 3)
    att = jnp.einsum('bhtd,bhsd->bhts', q, k) * (1.0 / math.sqrt(hd))
    mask = jnp.tril(jnp.ones((T, T)))
    att = jnp.where(mask[None, None] == 0, -jnp.inf, att)
    att = jax.nn.softmax(att, axis=-1)
    y = jnp.einsum('bhts,bhsd->bhtd', att, v)
    y = y.transpose(0, 2, 1, 3).reshape(B, T, C)
    return y @ wp.T + bp, att


if __name__ == "__main__":
    B, T, C, n_head = 2, 8, 32, 4

    key = jax.random.PRNGKey(0)
    keys = jax.random.split(key, 9)
    std = 1.0 / math.sqrt(C)
    wk = jax.random.normal(keys[0], (C, C), jnp.float32) * std
    bk = jax.random.normal(keys[1], (C,), jnp.float32) * 0.01
    wq = jax.random.normal(keys[2], (C, C), jnp.float32) * std
    bq = jax.random.normal(keys[3], (C,), jnp.float32) * 0.01
    wv = jax.random.normal(keys[4], (C, C), jnp.float32) * std
    bv = jax.random.normal(keys[5], (C,), jnp.float32) * 0.01
    wp = jax.random.normal(keys[6], (C, C), jnp.float32) * std
    bp = jax.random.normal(keys[7], (C,), jnp.float32) * 0.01
    x = jax.random.normal(keys[8], (B, T, C), jnp.float32)

    params = (wk, bk, wq, bq, wv, bv, wp, bp)

    y, att = causal_self_attention(x, params, n_head)
    y = jax.block_until_ready(y)
    att = jax.block_until_ready(att)

    y_ref, att_ref = _reference(x, params, n_head)
    # bf16 MXU operands (f32 accumulation) + bf16 attn_save writeback => compare
    # against the f32 reference with bf16-appropriate tolerances.
    assert jnp.allclose(y, y_ref, atol=5e-2, rtol=5e-2), float(jnp.max(jnp.abs(y - y_ref)))
    assert jnp.allclose(att.astype(jnp.float32), att_ref, atol=5e-2, rtol=5e-2), \
        float(jnp.max(jnp.abs(att.astype(jnp.float32) - att_ref)))

    print("KERNEL_OK")
</pallas_src>

<mosaic_0001>
module attributes {stable_mosaic.version = 11 : i64} {
  func.func @kernel(%arg0: i32, %arg1: i32, %arg2: memref<1x8x32xbf16, #tpu.memory_space<vmem>>, %arg3: memref<4x32x24xbf16, #tpu.memory_space<vmem>>, %arg4: memref<4x1x24xf32, #tpu.memory_space<vmem>>, %arg5: memref<4x8x32xbf16, #tpu.memory_space<vmem>>, %arg6: memref<1x32xf32, #tpu.memory_space<vmem>>, %arg7: memref<1x8x32xf32, #tpu.memory_space<vmem>>, %arg8: memref<1x1x8x8xbf16, #tpu.memory_space<vmem>>, %arg9: memref<8x32xf32, #tpu.memory_space<vmem>>, %arg10: memref<8x8xf32, #tpu.memory_space<vmem>>) attributes {dimension_semantics = [#tpu.dimension_semantics<parallel>, #tpu.dimension_semantics<arbitrary>], iteration_bounds = array<i64: 2, 4>, scalar_prefetch = 0 : i64, scratch_operands = 2 : i64, tpu.core_type = #tpu.core_type<tc>, window_params = [{transform_indices = @transform_0, window_bounds = array<i64: 1, 8, 32>}, {pipeline_mode = #tpu.pipeline_mode<synchronous>, transform_indices = @transform_1, window_bounds = array<i64: 4, 32, 24>}, {pipeline_mode = #tpu.pipeline_mode<synchronous>, transform_indices = @transform_2, window_bounds = array<i64: 4, 1, 24>}, {pipeline_mode = #tpu.pipeline_mode<synchronous>, transform_indices = @transform_3, window_bounds = array<i64: 4, 8, 32>}, {pipeline_mode = #tpu.pipeline_mode<synchronous>, transform_indices = @transform_4, window_bounds = array<i64: 1, 32>}, {transform_indices = @transform_5, window_bounds = array<i64: 1, 8, 32>}, {transform_indices = @transform_6, window_bounds = array<i64: 1, 1, 8, 8>}]} {
    %c0_i32 = arith.constant 0 : i32
    %0 = arith.cmpi eq, %arg1, %c0_i32 : i32
    %1 = arith.extui %0 : i1 to i32
    %c0_i32_0 = arith.constant 0 : i32
    %2 = arith.cmpi ne, %1, %c0_i32_0 : i32
    scf.if %2 {
      %cst_25 = arith.constant 0.000000e+00 : f32
      %50 = vector.broadcast %cst_25 : f32 to vector<8x32xf32>
      %c0_26 = arith.constant 0 : index
      %c0_27 = arith.constant 0 : index
      %51 = vector.load %arg9[%c0_26, %c0_27] : memref<8x32xf32, #tpu.memory_space<vmem>>, vector<8x32xf32>
      tpu.vector_store %arg9[%c0_26, %c0_27], %50 {strides = array<i32>} : memref<8x32xf32, #tpu.memory_space<vmem>>, vector<8x32xf32>,
      %52 = tpu.iota {dimensions = array<i32: 0>} : vector<8x8xi32>
      %53 = tpu.iota {dimensions = array<i32: 1>} : vector<8x8xi32>
      %54 = arith.cmpi sle, %53, %52 : vector<8x8xi32>
      %cst_28 = arith.constant 0.000000e+00 : f32
      %cst_29 = arith.constant 0xFF800000 : f32
      %55 = vector.broadcast %cst_28 : f32 to vector<8x8xf32>
      %56 = vector.broadcast %cst_29 : f32 to vector<8x8xf32>
      %57 = arith.select %54, %55, %56 : vector<8x8xi1>, vector<8x8xf32>
      %c0_30 = arith.constant 0 : index
      %c0_31 = arith.constant 0 : index
      %58 = vector.load %arg10[%c0_30, %c0_31] : memref<8x8xf32, #tpu.memory_space<vmem>>, vector<8x8xf32>
      tpu.vector_store %arg10[%c0_30, %c0_31], %57 {strides = array<i32>} : memref<8x8xf32, #tpu.memory_space<vmem>>, vector<8x8xf32>,
    } else {
    }
    %c0 = arith.constant 0 : index
    %c0_1 = arith.constant 0 : index
    %c0_2 = arith.constant 0 : index
    %3 = vector.load %arg2[%c0, %c0_1, %c0_2] : memref<1x8x32xbf16, #tpu.memory_space<vmem>>, vector<1x8x32xbf16>
    %4 = vector.shape_cast %3 : vector<1x8x32xbf16> to vector<8x32xbf16>
    %5 = arith.index_cast %arg1 : i32 to index
    %c0_3 = arith.constant 0 : index
    %c0_4 = arith.constant 0 : index
    %6 = vector.load %arg3[%5, %c0_3, %c0_4] : memref<4x32x24xbf16, #tpu.memory_space<vmem>>, vector<1x32x24xbf16>
    %7 = vector.shape_cast %6 : vector<1x32x24xbf16> to vector<32x24xbf16>
    %8 = arith.index_cast %arg1 : i32 to index
    %c0_5 = arith.constant 0 : index
    %c0_6 = arith.constant 0 : index
    %9 = vector.load %arg4[%8, %c0_5, %c0_6] : memref<4x1x24xf32, #tpu.memory_space<vmem>>, vector<1x1x24xf32>
    %10 = vector.shape_cast %9 : vector<1x1x24xf32> to vector<1x24xf32>
    %cst = arith.constant dense<0.000000e+00> : vector<8x24xf32>
    %11 = tpu.matmul %4, %7, %cst {dimension_numbers = #tpu.dot_dimension_numbers<[1], [0], [0], [1], [0, 0, 1, 1], [], []>} : vector<8x32xbf16>, vector<32x24xbf16>, vector<8x24xf32> -> vector<8x24xf32>
    %12 = vector.broadcast %10 : vector<1x24xf32> to vector<8x24xf32>
    %13 = arith.addf %11, %12 : vector<8x24xf32>
    %14 = vector.extract_strided_slice %13 {offsets = [0, 0], sizes = [8, 8], strides = [1, 1]} : vector<8x24xf32> to vector<8x8xf32>
    %15 = arith.truncf %14 : vector<8x8xf32> to vector<8x8xbf16>
    %16 = vector.extract_strided_slice %13 {offsets = [0, 8], sizes = [8, 8], strides = [1, 1]} : vector<8x24xf32> to vector<8x8xf32>
    %17 = arith.truncf %16 : vector<8x8xf32> to vector<8x8xbf16>
    %18 = vector.extract_strided_slice %13 {offsets = [0, 16], sizes = [8, 8], strides = [1, 1]} : vector<8x24xf32> to vector<8x8xf32>
    %19 = arith.truncf %18 : vector<8x8xf32> to vector<8x8xbf16>
    %cst_7 = arith.constant dense<0.000000e+00> : vector<8x8xf32>
    %20 = tpu.matmul %15, %17, %cst_7 {dimension_numbers = #tpu.dot_dimension_numbers<[1], [1], [0], [0], [0, 0, 1, 0], [], []>} : vector<8x8xbf16>, vector<8x8xbf16>, vector<8x8xf32> -> vector<8x8xf32>
    %c0_8 = arith.constant 0 : index
    %c0_9 = arith.constant 0 : index
    %21 = vector.load %arg10[%c0_8, %c0_9] : memref<8x8xf32, #tpu.memory_space<vmem>>, vector<8x8xf32>
    %22 = arith.addf %20, %21 : vector<8x8xf32>
    %cst_10 = arith.constant dense<0xFF800000> : vector<8xf32>
    %23 = vector.multi_reduction <maximumf>, %22, %cst_10 [1] : vector<8x8xf32> to vector<8xf32>
    %24 = vector.shape_cast %23 : vector<8xf32> to vector<8x1xf32>
    %25 = vector.broadcast %24 : vector<8x1xf32> to vector<8x8xf32>
    %26 = arith.subf %22, %25 : vector<8x8xf32>
    %27 = math.exp %26 : vector<8x8xf32>
    %cst_11 = arith.constant dense<0.000000e+00> : vector<8xf32>
    %28 = vector.multi_reduction <add>, %27, %cst_11 [1] : vector<8x8xf32> to vector<8xf32>
    %29 = vector.shape_cast %28 : vector<8xf32> to vector<8x1xf32>
    %30 = tpu.reciprocal %29 {approx = true} : vector<8x1xf32> -> vector<8x1xf32>
    %31 = vector.broadcast %30 : vector<8x1xf32> to vector<8x8xf32>
    %32 = arith.mulf %27, %31 : vector<8x8xf32>
    %33 = arith.truncf %32 : vector<8x8xf32> to vector<8x8xbf16>
    %c0_12 = arith.constant 0 : index
    %c0_13 = arith.constant 0 : index
    %c0_14 = arith.constant 0 : index
    %c0_15 = arith.constant 0 : index
    %34 = vector.load %arg8[%c0_12, %c0_13, %c0_14, %c0_15] : memref<1x1x8x8xbf16, #tpu.memory_space<vmem>>, vector<1x1x8x8xbf16>
    %35 = vector.shape_cast %34 : vector<1x1x8x8xbf16> to vector<8x8xbf16>
    %36 = vector.shape_cast %33 : vector<8x8xbf16> to vector<1x1x8x8xbf16>
    tpu.vector_store %arg8[%c0_12, %c0_13, %c0_14, %c0_15], %36 {strides = array<i32>} : memref<1x1x8x8xbf16, #tpu.memory_space<vmem>>, vector<1x1x8x8xbf16>,
    %37 = arith.truncf %32 : vector<8x8xf32> to vector<8x8xbf16>
    %cst_16 = arith.constant dense<0.000000e+00> : vector<8x8xf32>
    %38 = tpu.matmul %37, %19, %cst_16 {dimension_numbers = #tpu.dot_dimension_numbers<[1], [0], [0], [1], [0, 0, 1, 1], [], []>} : vector<8x8xbf16>, vector<8x8xbf16>, vector<8x8xf32> -> vector<8x8xf32>
    %c0_17 = arith.constant 0 : index
    %c0_18 = arith.constant 0 : index
    %39 = vector.load %arg9[%c0_17, %c0_18] : memref<8x32xf32, #tpu.memory_space<vmem>>, vector<8x32xf32>
    %40 = arith.truncf %38 : vector<8x8xf32> to vector<8x8xbf16>
    %41 = arith.index_cast %arg1 : i32 to index
    %c0_19 = arith.constant 0 : index
    %c0_20 = arith.constant 0 : index
    %42 = vector.load %arg5[%41, %c0_19, %c0_20] : memref<4x8x32xbf16, #tpu.memory_space<vmem>>, vector<1x8x32xbf16>
    %43 = vector.shape_cast %42 : vector<1x8x32xbf16> to vector<8x32xbf16>
    %cst_21 = arith.constant dense<0.000000e+00> : vector<8x32xf32>
    %44 = tpu.matmul %40, %43, %cst_21 {dimension_numbers = #tpu.dot_dimension_numbers<[1], [0], [0], [1], [0, 0, 1, 1], [], []>} : vector<8x8xbf16>, vector<8x32xbf16>, vector<8x32xf32> -> vector<8x32xf32>
    %45 = arith.addf %39, %44 : vector<8x32xf32>
    %c0_22 = arith.constant 0 : index
    %c0_23 = arith.constant 0 : index
    %46 = vector.load %arg9[%c0_22, %c0_23] : memref<8x32xf32, #tpu.memory_space<vmem>>, vector<8x32xf32>
    tpu.vector_store %arg9[%c0_22, %c0_23], %45 {strides = array<i32>} : memref<8x32xf32, #tpu.memory_space<vmem>>, vector<8x32xf32>,
    %c3_i32 = arith.constant 3 : i32
    %47 = arith.cmpi eq, %arg1, %c3_i32 : i32
    %48 = arith.extui %47 : i1 to i32
    %c0_i32_24 = arith.constant 0 : i32
    %49 = arith.cmpi ne, %48, %c0_i32_24 : i32
    scf.if %49 {
      %c0_25 = arith.constant 0 : index
      %c0_26 = arith.constant 0 : index
      %50 = vector.load %arg9[%c0_25, %c0_26] : memref<8x32xf32, #tpu.memory_space<vmem>>, vector<8x32xf32>
      %c0_27 = arith.constant 0 : index
      %c0_28 = arith.constant 0 : index
      %51 = vector.load %arg6[%c0_27, %c0_28] : memref<1x32xf32, #tpu.memory_space<vmem>>, vector<1x32xf32>
      %52 = vector.broadcast %51 : vector<1x32xf32> to vector<8x32xf32>
      %53 = arith.addf %50, %52 : vector<8x32xf32>
      %c0_29 = arith.constant 0 : index
      %c0_30 = arith.constant 0 : index
      %c0_31 = arith.constant 0 : index
      %54 = vector.load %arg7[%c0_29, %c0_30, %c0_31] : memref<1x8x32xf32, #tpu.memory_space<vmem>>, vector<1x8x32xf32>
      %55 = vector.shape_cast %54 : vector<1x8x32xf32> to vector<8x32xf32>
      %56 = vector.shape_cast %53 : vector<8x32xf32> to vector<1x8x32xf32>
      tpu.vector_store %arg7[%c0_29, %c0_30, %c0_31], %56 {strides = array<i32>} : memref<1x8x32xf32, #tpu.memory_space<vmem>>, vector<1x8x32xf32>,
    } else {
    }
    return
  }
  func.func @transform_0(%arg0: i32, %arg1: i32) -> (i32, i32, i32) {
    %c0_i32 = arith.constant 0 : i32
    %c0_i32_0 = arith.constant 0 : i32
    %c0_i32_1 = arith.constant 0 : i32
    return %arg0, %c0_i32, %c0_i32_0 : i32, i32, i32
  }
  func.func @transform_1(%arg0: i32, %arg1: i32) -> (i32, i32, i32) {
    %c0_i32 = arith.constant 0 : i32
    %c0_i32_0 = arith.constant 0 : i32
    %c0_i32_1 = arith.constant 0 : i32
    %c0_i32_2 = arith.constant 0 : i32
    return %c0_i32, %c0_i32_0, %c0_i32_1 : i32, i32, i32
  }
  func.func @transform_2(%arg0: i32, %arg1: i32) -> (i32, i32, i32) {
    %c0_i32 = arith.constant 0 : i32
    %c0_i32_0 = arith.constant 0 : i32
    %c0_i32_1 = arith.constant 0 : i32
    %c0_i32_2 = arith.constant 0 : i32
    return %c0_i32, %c0_i32_0, %c0_i32_1 : i32, i32, i32
  }
  func.func @transform_3(%arg0: i32, %arg1: i32) -> (i32, i32, i32) {
    %c0_i32 = arith.constant 0 : i32
    %c0_i32_0 = arith.constant 0 : i32
    %c0_i32_1 = arith.constant 0 : i32
    %c0_i32_2 = arith.constant 0 : i32
    return %c0_i32, %c0_i32_0, %c0_i32_1 : i32, i32, i32
  }
  func.func @transform_4(%arg0: i32, %arg1: i32) -> (i32, i32) {
    %c0_i32 = arith.constant 0 : i32
    %c0_i32_0 = arith.constant 0 : i32
    %c0_i32_1 = arith.constant 0 : i32
    return %c0_i32, %c0_i32_0 : i32, i32
  }
  func.func @transform_5(%arg0: i32, %arg1: i32) -> (i32, i32, i32) {
    %c0_i32 = arith.constant 0 : i32
    %c0_i32_0 = arith.constant 0 : i32
    %c0_i32_1 = arith.constant 0 : i32
    return %arg0, %c0_i32, %c0_i32_0 : i32, i32, i32
  }
  func.func @transform_6(%arg0: i32, %arg1: i32) -> (i32, i32, i32, i32) {
    %c0_i32 = arith.constant 0 : i32
    %c0_i32_0 = arith.constant 0 : i32
    %c0_i32_1 = arith.constant 0 : i32
    return %arg0, %arg1, %c0_i32, %c0_i32_0 : i32, i32, i32, i32
  }
}

</mosaic_0001>

<bundles_post_ra>
// kernel: tpu_custom_call.1
= control target key start
LH: loop header
LB: loop body
LE: loop exit
PB: predicated region body
PF: predicated region fallthrough
CT: control target
= control target key end

     0   :  { %s1152_s0 = inlined_call_operand.vmem [shape: bf16[2,8,32], index: 0, kind: input, shape index: {}]   ;;  %s1153_s1 = inlined_call_operand.vmem [shape: bf16[4,32,24], index: 1, kind: input, shape index: {}]   ;;  %s1154_s2 = inlined_call_operand.vmem [shape: f32[4,1,24], index: 2, kind: input, shape index: {}]   ;;  %s1155_s3 = inlined_call_operand.vmem [shape: bf16[4,8,32], index: 3, kind: input, shape index: {}]   ;;  %s1156_s4 = inlined_call_operand.vmem [shape: f32[1,32], index: 4, kind: input, shape index: {}]   ;;  %s1157_s5 = inlined_call_operand.hbm [shape: f32[2,8,32], index: 5, kind: output, shape index: {0}]   ;;  %s1158_s6 = inlined_call_operand.hbm [shape: bf16[2,4,8,8], index: 6, kind: output, shape index: {1}]  }
   0x1   :  { %1166 = sst [smem:[#allocation16_spill]] %s1152_s0 }
   0x2   :  { %1167 = sst [smem:[#allocation17_spill]] %s1153_s1 }
   0x3   :  { %1168 = sst [smem:[#allocation18_spill]] %s1154_s2 }
   0x4   :  { %1169 = sst [smem:[#allocation19_spill]] %s1155_s3 }
   0x5   :  { %1170 = sst [smem:[#allocation20_spill]] %s1156_s4 }
   0x6   :  { %12 = vsyncpa [#allocation5], 0 }
   0x7   :  { %14 = vsyncpa [#allocation5 + $0x1], 0 }
   0x8   :  { %15 = vsyncpa [#allocation7], 0 }
   0x9   :  { %17 = vsyncpa [#allocation7 + $0x1], 0  ;;  %s910_s21 = smov 0   ;;  %s912_s22 = smov 0  }
   0xa   :  { %s914_s23 = smov 0   ;;  %s916_s24 = smov 0  }
   0xb   :  { %s918_s25 = smov 0   ;;  %s920_s26 = smov 0  }
   0xc   :  { %s922_s27 = smov 0   ;;  %s924_s28 = smov 0  }
   0xd   :  { %s926_s29 = smov 0   ;;  %s928_s30 = smov 0  }
   0xe   :  { %s930_s7 = smov 0  }
   0xf LB: > { %1171 = sst [smem:[#allocation10_spill]] %s849_s26  ;;  %s574_s8 = sadd.s32 4294967295, %s869_s7   ;;  %s869_s7 = sphi %s930_s7, %s23_s7   ;;  %s865_s30 = sphi %s928_s30, %s1199_s30   ;;  %s861_s29 = sphi %s926_s29, %s1198_s29   ;;  %s857_s28 = sphi %s924_s28, %s1197_s28   ;;  %s853_s27 = sphi %s922_s27, %s1196_s27   ;;  %s849_s26 = sphi %s920_s26, %s1195_s26   ;;  %s845_s25 = sphi %s918_s25, %s1204_s25   ;;  %s841_s24 = sphi %s916_s24, %s1203_s24   ;;  %s837_s23 = sphi %s914_s23, %s1202_s23   ;;  %s833_s22 = sphi %s912_s22, %s1201_s22   ;;  %s829_s21 = sphi %s910_s21, %s1200_s21  }
  0x10   : > { %1172 = sst [smem:[#allocation11_spill]] %s861_s29  ;;  %s575_s9 = sadd.s32 4294967294, %s869_s7  }
  0x11   : > { %1173 = sst [smem:[#allocation12_spill]] %s865_s30  ;;  %s32_s10 = sadd.s32 1, %s861_s29 }
  0x12   : > { %s35_s11 = sadd.s32 1, %s865_s30  ;;  %p33_p0 = scmp.ge.s32.totalorder %s32_s10, 4 }
  0x13   : > { %s152_s12 = sadd.s32 1, %s849_s26  ;;  %p162_p1 = scmp.ne.s32.totalorder %s849_s26, %s845_s25 }
  0x14   : > { %p972_p2 = scmp.eq.s32.totalorder %s574_s8, 7  ;;  %s1206_s10 = smov (%p33_p0, %s32_s10), 0 }
  0x15   : > { %1175 = sst [smem:[#allocation13_spill]] %s1206_s10  ;;  %s1208_s11 = smov (!%p33_p0, %s35_s11), %s865_s30 }
  0x16   : > { %p981_p3 = por %p972_p2, %p162_p1  ;;  %p168_p4 = scmp.ne.s32.totalorder %s845_s25, %s841_s24 }
  0x17   : > { %p37_p5 = scmp.ge.s32.totalorder %s1208_s11, 2  ;;  %p987_p6 = scmp.eq.s32.totalorder %s575_s9, 7 }
  0x18   : > { %s176_s16 = ssub.s32 %s861_s29, %s1206_s10  ;;  %s180_s17 = sadd.s32 1, %s837_s23 }
  0x19   : > { %s1210_s11 = smov (%p37_p5, %s1208_s11), 0  ;;  %p998_p7 = por %p987_p6, %p168_p4 }
  0x1a   : > { %1178 = sst [smem:[#allocation14_spill]] %s1210_s11  ;;  %p190_p8 = scmp.ne.s32.totalorder %s837_s23, %s833_s22 }
  0x1b   : > { %s149_s19 = ssub.s32 %s865_s30, %s1210_s11  ;;  %p196_p9 = scmp.ne.s32.totalorder %s833_s22, %s829_s21 }
  0x1c   : > { %p150_p10 = scmp.eq.s32.totalorder %s149_s19, 0  ;;  %s177_s20 = sor.u32 %s176_s16, %s149_s19 }
  0x1d   : > { %p178_p11 = scmp.eq.s32.totalorder %s177_s20, 0  ;;  %p1010_p12 = por %p190_p8, %p972_p2 }
  0x1e   : > { %s1015_s9 = scalar_select %p150_p10, %s849_s26, %s152_s12  }
  0x1f   : > { %s1018_s10 = scalar_select %p178_p11, %s837_s23, %s180_s17  }
  0x20   : > { %1181 = sst [smem:[#allocation15_spill]] %s1015_s9  ;;  %p1022_p13 = por %p196_p9, %p987_p6 }
  0x21   : > { %p578_p0 = scmp.ge.s32.totalorder %s869_s7, 1  ;;  %p234_p1 = scmp.lt.s32.totalorder %s869_s7, 9 }
  0x23   : > { %p235_p4 = pnand %p578_p0, %p234_p1 }
  0x24   : > { %s1165_s13 = sand.u32 (!%p235_p4), 1, %s845_s25   ;;  %s1164_s12 = sand.u32 (!%p235_p4), 1, %s833_s22  }
  0x25   : > { %238 = sbr.rel (%p235_p4) target bundleno = 1036 (0x40c), region = 40  ;;  %s1032_s16 = sshll.u32 (!%p235_p4), %s1165_s13, 3 }
  0x26   : > { %s1036_s15 = sshll.u32 (!%p235_p4), %s1164_s12, 2  ;;  %p268_p2 = scmp.lt.s32.totalorder (!%p235_p4), %s857_s28, 1 }
  0x27   : > { %s1183_s0 = sld [smem:[#allocation16_spill]] (!%p235_p4)  ;;  %p582_p5 = scmp.ne.s32.totalorder (!%p235_p4), %s853_s27, 0 }
  0x2a   : > { %s269_s17 = scalar_select %p268_p2, %s857_s28, 1 }
  0x2b   : > { %276 = sbr.rel (%p582_p5) target bundleno = 55 (0x37), region = 44 }
  0x2c   : > { %s581_s19 = sshll.u32 %s269_s17, 2 }
  0x2d   : > { %s271_s30 = scalar_lea.vmem %s1183_s0, %s581_s19 }
  0x30   : > { %vm277_vm0 = vcmask 261120   ;;  %v279_v0 = vlaneseq  ;;  %v871_v1 = vmov 0.0   ;;  %vm285_vm1 = vcmask 64512  }
  0x31   : > { %278 = vst.msk [vmem:[#allocation2] sm:$0xff] %vm277_vm0, %v871_v1  ;;  %v872_v4 = vmov -inf  }
  0x32   : > { %v280_v2 = vshrl.u32 %v279_v0, 7  ;;  %v282_v3 = vand.u32 127, %v279_v0 }
  0x34   : > { %vm283_vm2 = vcmp.le.s32.totalorder %v282_v3, %v280_v2 }
  0x35   : > { %v284_v5 = vsel %vm283_vm2, 0.0, %v872_v4 }
  0x36   : > { %286 = vst.msk [vmem:[#allocation3] sm:$0xff] %vm285_vm1, %v284_v5 }
  0x37 PF: > { %s606_s11 = sshll.u32 %s853_s27, 4  ;;  %s1184_s2 = sld [smem:[#allocation18_spill]]  ;;  %v287_v8 = vld [vmem:[%s271_s30] sm:$0xf]  ;;  %vm312_vm3 = vcmask 261120   ;;  %vm334_vm4 = vcmask 64512  }
  0x38   : > { %s1185_s1 = sld [smem:[#allocation17_spill]]  ;;  %s873_s26 = smov 120   ;;  %vm366_vm5 = vcmask 60416   ;;  %vm373_vm6 = vcmask 1043456   ;;  %v390_v37 = vld [vmem:[#allocation2] sm:$0xff] }
  0x39   : > { %s1186_s30 = scalar_lea.vmem [#allocation6], %s1036_s15  ;;  %s1187_s3 = sld [smem:[#allocation19_spill]] }
  0x3a   : > { %p598_p6 = scmp.ne.s32.totalorder %s853_s27, 3 }
  0x3b   : > { %s1188_s4 = sld [smem:[#allocation20_spill]] (!%p598_p6) }
  0x3d   : > { %s295_s20 = scalar_lea.vmem %s1184_s2, %s853_s27  ;;  %v330_v16 = vld [vmem:[#allocation3] sm:$0xff] }
  0x3e   : > { %s290_s9 = scalar_lea.vmem %s1185_s1, %s606_s11  ;;  %v713_v9 = vld [vmem:[%s295_s20] ss:$0 sm:$0xff]  ;;  %s1189_s20 = scalar_lea.vmem (!%p598_p6), [#allocation4], %s1032_s16 }
  0x3f   : > { %v608_v6 = vld [vmem:[%s290_s9 + $0x8] sm:$0xff]  ;;  %v607_v7 = vld [vmem:[%s290_s9] sm:$0xff]  ;;  %s596_s9 = sshll.u32 %s853_s27, 2 }
  0x40   : > { %322 = vmatpush.bf16.msra.mxu0 %v608_v6  ;;  %s393_s11 = scalar_lea.vmem %s1187_s3, %s596_s9 }
  0x41   : > { %v394_v32 = vld [vmem:[%s393_s11] sm:$0xf] }
  0x42   : > { %v399_v33 = vsel %vm373_vm6, %v394_v32, 0 }
  0x43   : > { %408 = vmatpush.bf16.msra.mxu3 %v399_v33 }
  0x44   : > { %323 = vmatpush.bf16.msra.mxu0 %v607_v7 }
  0x47   : > { %593 = vmatmul.msk.bf16.vlgmr.msra.gmra.mxu0 %vm312_vm3, %v287_v8 }
  0xc4   : > { %v325_v10 = vpop.f32.mrf.mxu0 }
  0xc5   : > { %v326_v11 = vadd.f32 %v713_v9, %v325_v10 }
  0xc7   : > { %v329_v12 = vpack.c.bf16 %v326_v11, %v326_v11 }
  0xc9   : > { %332 = vrot.lane.b32.xlu0 %v329_v12, %s873_s26  ;;  %s874_s26 = smov 112  }
  0xcc   : > { %v327_v13 = vpop.f32.mrf.mxu0 }
 0x13b   : > { %v333_v14 = vpop.permute.xlu0 %332 }
 0x13c   : > { %v339_v15 = vsel %vm334_vm4, %v333_v14, 0 }
 0x13d   : > { %348 = vmatpush.bf16.xpose.msra.mxu1 %v339_v15 }
 0x144   : > { %594 = vmatmul.msk.bf16.vlgmr.msra.gmra.mxu1 %vm334_vm4, %v329_v12 }
 0x1c1   : > { %v350_v17 = vpop.f32.mrf.mxu1 }
 0x1c2   : > { %v351_v18 = vadd.f32 %v350_v17, %v330_v16 }
 0x1c4   : > { %v354_v19 = vsel %vm334_vm4, %v351_v18, -inf }
 0x1c5   : > { %355 = vmax.xlane.f32.xlu0 %v354_v19 }
 0x1c9   : > { %v352_v20 = vpop.f32.mrf.mxu1 }
 0x238   : > { %v356_v21 = vpop.xlane.xlu0 %355 }
 0x239   : > { %v357_v22 = vsub.f32 %v351_v18, %v356_v21 }
 0x23b   : > { %v358_v23 = vmul.f32 1.442695, %v357_v22 }
 0x23d   : > { %714 = vpow2.f32 %v358_v23 }
 0x243   : > { %v715_v24 = vpop.eup %714 }
 0x244   : > { %v360_v25 = vsel %vm334_vm4, %v715_v24, 0.0 }
 0x245   : > { %361 = vadd.xlane.f32.xlu1 %v360_v25 }
 0x25e   : > { %368 = vrot.lane.b32.xlu1 %v329_v12, %s874_s26 }
 0x2b8   : > { %v362_v26 = vpop.xlane.xlu1 %361 }
 0x2b9   : > { %716 = vrcp.f32 %v362_v26 }
 0x2bf   : > { %v717_v27 = vpop.eup %716 }
 0x2c0   : > { %v364_v28 = vmul.f32 %v717_v27, %v715_v24 }
 0x2c2   : > { %v365_v29 = vpack.c.bf16 %v364_v28, %v364_v28 }
 0x2c4   : > { %367 = vst.msk [vmem:[%s1186_s30] sm:$0xf] %vm366_vm5, %v365_v29 }
 0x2d0   : > { %v369_v30 = vpop.permute.xlu1 %368 }
 0x2d1   : > { %v375_v31 = vsel %vm373_vm6, %v369_v30, 0 }
 0x2d2   : > { %384 = vmatpush.bf16.msra.mxu2 %v375_v31 }
 0x2d5   : > { %595 = vmatmul.msk.bf16.vlgmr.msra.gmra.mxu2 %vm334_vm4, %v365_v29 }
 0x358   : > { %v386_v34 = vpop.f32.mrf.mxu2 }
 0x359   : > { %v391_v35 = vpack.c.bf16 %v386_v34, %v386_v34 }
 0x35b   : > { %597 = vmatmul.msk.bf16.vlgmr.msra.gmra.mxu3 %vm334_vm4, %v391_v35 }
 0x360   : > { %v388_v36 = vpop.f32.mrf.mxu2 }
 0x3de   : > { %v410_v38 = vpop.f32.mrf.mxu3 }
 0x3df   : > { %v414_v39 = vadd.f32 %v410_v38, %v390_v37 }
 0x3e1   : > { %415 = vst.msk [vmem:[#allocation2] sm:$0xff] %vm312_vm3, %v414_v39 }
 0x3e2   : > { %419 = sbr.rel (%p598_p6) target bundleno = 1004 (0x3ec), region = 48 }
 0x3e6   : > { %v412_v40 = vpop.f32.mrf.mxu3 }
 0x3e7   : > { %v718_v42 = vld [vmem:[%s1188_s4] ss:$0 sm:$0xff] }
 0x3e8   : > { %v420_v41 = vld [vmem:[#allocation2] sm:$0xff] }
 0x3e9   : > { %v425_v43 = vadd.f32 %v718_v42, %v420_v41 }
 0x3eb   : > { %426 = vst.msk [vmem:[%s1189_s20] sm:$0xff] %vm312_vm3, %v425_v43 }
 0x3ec PF: > { %s601_s26 = sshll.u32 %s857_s28, 3  ;;  %s1190_s12 = scalar_lea.vmem [#allocation4], %s1032_s16 }
 0x3ed   : > { %s443_s13 = scalar_lea.hbm %s1157_s5, %s601_s26  ;;  %s445_s11 = sshll.u32 %s1190_s12, 4  ;;  %s446_s11 = int_to_ptr.vmem [resolvable:$true] %s445_s11 }
 0x3ee   : > { %s447_s17 = sshll.u32 %s443_s13, 4  ;;  %s1191_s19 = sand.u32 1, %s845_s25   ;;  %s448_s17 = int_to_ptr.hbm [resolvable:$true] %s447_s17 }
 0x3ef   : > { %s428_s0 = scalar_lea.sflag [#allocation5], %s1191_s19  ;;  %s733_s1 = sshra.s32 %s448_s17, 4  ;;  %s734_s1 = int_to_ptr.hbm [resolvable:$true] %s733_s1 }
 0x3f0   : > { %s735_s20 = scalar_lea.hbm %s734_s1, 8  ;;  %s739_s4 = scalar_lea.hbm %s1157_s5, 16 }
 0x3f1   : > { %p736_p8 = scmp.ne.s32.totalorder %s734_s1, %s735_s20  ;;  %p740_p11 = scmp.lt.s32.totalorder %s734_s1, %s1157_s5 }
 0x3f2   : > { %p741_p0 = scmp.lt.s32.totalorder %s739_s4, %s735_s20 }
 0x3f3   : > { %p737_p9 = pnand %p736_p8, %p981_p3 }
 0x3f4   : > { %p742_p1 = por %p741_p0, %p740_p11 }
 0x3f5   : > { %p738_p10 = pneg %p737_p9 }
 0x3f7   : > { %p743_p4 = pnand %p742_p1, %p738_p10 }
 0x3f9   : > { %746 = shalt.err (!%p743_p4)
}
 0x3fa   : > { %609 = dma.vmem_to_hbm [thread:$0]  (%p981_p3), %s446_s11, 128, %s448_s17, %s428_s0  }
 0x3fb   : > { %s602_s16 = sshll.u32 %s857_s28, 2  ;;  %s1192_s9 = scalar_lea.vmem [#allocation6], %s1036_s15 }
 0x3fc   : > { %s461_s2 = sshll.u32 %s1192_s9, 4  ;;  %s457_s3 = sadd.s32 %s853_s27, %s602_s16  ;;  %s462_s2 = int_to_ptr.vmem [resolvable:$true] %s461_s2 }
 0x3fd   : > { %s603_s13 = sshll.u32 %s457_s3, 2  ;;  %s1193_s20 = sand.u32 1, %s833_s22  }
 0x3fe   : > { %s459_s1 = scalar_lea.hbm %s1158_s6, %s603_s13  ;;  %s433_s14 = scalar_lea.sflag [#allocation7], %s1193_s20 }
 0x3ff   : > { %s463_s4 = sshll.u32 %s459_s1, 4  ;;  %s767_s27 = scalar_lea.hbm %s1158_s6, 32  ;;  %s464_s4 = int_to_ptr.hbm [resolvable:$true] %s463_s4 }
 0x400   : > { %s761_s30 = sshra.s32 %s464_s4, 4  ;;  %s762_s30 = int_to_ptr.hbm [resolvable:$true] %s761_s30 }
 0x401   : > { %s763_s26 = scalar_lea.hbm %s762_s30, 4  ;;  %p768_p6 = scmp.lt.s32.totalorder %s762_s30, %s1158_s6 }
 0x402   : > { %p764_p2 = scmp.ne.s32.totalorder %s762_s30, %s763_s26  ;;  %p769_p8 = scmp.lt.s32.totalorder %s767_s27, %s763_s26 }
 0x404   : > { %p765_p3 = pnand %p764_p2, %p1010_p12  ;;  %p770_p9 = por %p769_p8, %p768_p6 }
 0x406   : > { %p766_p5 = pneg %p765_p3 }
 0x408   : > { %p771_p10 = pnand %p770_p9, %p766_p5 }
 0x40a   : > { %774 = shalt.err (!%p771_p10)
}
 0x40b   : > { %610 = dma.vmem_to_hbm [thread:$0]  (%p1010_p12), %s462_s2, 64, %s464_s4, %s433_s14  }
 0x40c PF: > { %p620_p11 = scmp.ge.s32.totalorder %s869_s7, 2  ;;  %s475_s17 = sand.u32 1, %s841_s24  }
 0x40d   : > { %s476_s16 = scalar_lea.sflag [#allocation5], %s475_s17 }
 0x40e   : > { %p614_p0 = pnand %p620_p11, %p998_p7 }
 0x410   : > { %p615_p1 = pneg %p614_p0 }
 0x412   : > { %820 = dma.done.wait (%p615_p1), %s476_s16, 128  }
 0x413   : > { %822 = vsyncadd (%p615_p1), %s476_s16, 4294967168  ;;  %s485_s9 = sand.u32 1, %s829_s21   ;;  %p617_p4 = pnand %p620_p11, %p1022_p13 }
 0x414   : > { %s486_s8 = scalar_lea.sflag [#allocation7], %s485_s9 }
 0x415   : > { %p618_p2 = pneg %p617_p4 }
 0x417   : > { %824 = dma.done.wait (%p618_p2), %s486_s8, 64  }
 0x418   : > { %826 = vsyncadd (%p618_p2), %s486_s8, 4294967232  ;;  %s23_s7 = sadd.s32 1, %s869_s7   ;;  %s1194_s18 = sld [smem:[#allocation10_spill]] }
 0x419   : > { %p20_p12 = scmp.ge.s32.totalorder %s23_s7, 10   ;;  %s1195_s26 = sld [smem:[#allocation15_spill]] }
 0x41a   : > { %s1196_s27 = sld [smem:[#allocation11_spill]]  ;;  %s1200_s21 = smov %s833_s22 }
 0x41b   : > { %s1197_s28 = sld [smem:[#allocation12_spill]]  ;;  %s1201_s22 = smov %s837_s23 }
 0x41c   : > { %s1198_s29 = sld [smem:[#allocation13_spill]]  ;;  %s1202_s23 = smov %s1018_s10 }
 0x41d   : > { %s1199_s30 = sld [smem:[#allocation14_spill]]  ;;  %s1203_s24 = smov %s845_s25 }
 0x41e   : > { %s1204_s25 = smov %s1194_s18  ;;  %22 = sbr.rel (!%p20_p12) target bundleno = 15 (0xf), region = 103 }
 0x423   :  { %492 = vsyncpa [#allocation5], 1 }
 0x424   :  { %494 = vsyncpa [#allocation5 + $0x1], 1 }
 0x425   :  { %495 = vsyncpa [#allocation7], 1 }
 0x426   :  { %497 = vsyncpa [#allocation7 + $0x1], 1 }

</bundles_post_ra>
